<compile_context>
chip_gen: v5e
topology: v5e:2x2
jax: 0.10.0
libtpu: 0.0.40
codegen_flags: <defaults>
</compile_context>

<pallas_src>
import math

import jax
import jax.numpy as jnp
from jax.experimental import pallas as pl
from jax.experimental.pallas import tpu as pltpu


def make_pos_encoding(max_len: int, embed_size: int, dtype=jnp.float32) -> jnp.ndarray:
    """Deterministic sin/cos positional-encoding table, shape (max_len, embed_size)."""
    positions = jnp.arange(0, max_len, dtype=jnp.float32)[:, None]              # (L, 1)
    div_term = jnp.exp(
        jnp.arange(0, embed_size, 2, dtype=jnp.float32)
        * -(math.log(10000.0) / embed_size)
    )                                                                            # (E/2,)
    angles = positions * div_term                                                # (L, E/2)
    pe = jnp.zeros((max_len, embed_size), dtype=jnp.float32)
    pe = pe.at[:, 0::2].set(jnp.sin(angles))
    pe = pe.at[:, 1::2].set(jnp.cos(angles))
    return pe.astype(dtype)


def _add_pe_kernel(x_ref, pe_ref, o_ref):
    # x_ref / o_ref: (Bb, TS, E); pe_ref: (TS, E) shared positional-encoding tile
    # (resident across the inner batch-block loop).  Broadcast add over Bb.
    o_ref[...] = x_ref[...] + pe_ref[...]


# Per-block DMA target (bytes).  6 live blocks (2x x-in, 2x out, 2x pe) -> ~36 MiB
# working set, under the explicit 48 MiB scoped-VMEM limit on every generation.
_TARGET_BLOCK_BYTES = 6 * 1024 * 1024
_VMEM_LIMIT_BYTES = 48 * 1024 * 1024


def _pick_blocks(B: int, S: int, E: int, itemsize: int,
                 target_bytes: int = _TARGET_BLOCK_BYTES) -> tuple[int, int]:
    """Byte-based block sizing -> (batch_block, seq_tile), layout-legal for TPU."""
    sub = 16 if itemsize == 2 else 8          # native sublane packing (bf16 vs f32)
    row_bytes = E * itemsize
    max_rows = max(sub, target_bytes // row_bytes)
    if S <= max_rows:
        # Single seq block: round up to a sublane multiple so the block stays
        # layout-legal against the (longer) full pe table, then fold batches
        # into the block to keep per-step DMAs large for small-S / large-B.
        ts = S if S % sub == 0 else ((S + sub - 1) // sub) * sub
        bb = int(max(1, min(B, target_bytes // max(1, ts * row_bytes))))
        return bb, ts
    # Long sequence: tile the seq dim, one batch per block.
    ts = max(sub, (max_rows // sub) * sub)    # multiple of sublane count
    return 1, ts


def positional_encoding_forward(
    x: jnp.ndarray,
    pe_table: jnp.ndarray,
    *,
    seq_tile: int | None = None,
    batch_block: int | None = None,
    min_pallas_bytes: int = 1 << 20,
    donate_x: bool = False,
) -> jnp.ndarray:
    """x: (B, S, E); pe_table: (max_len, E).  Returns x + pe_table[:S] (broadcast over B)."""
    B, S, E = x.shape
    max_len, e_pe = pe_table.shape
    if e_pe != E:
        raise ValueError(f"embed mismatch: x has E={E}, pe_table has E={e_pe}")
    if S > max_len:
        raise ValueError(f"sequence length {S} exceeds pe_table max_len {max_len}")
    if pe_table.dtype != x.dtype:
        # One-time cast fallback; build the table in x.dtype to avoid this op.
        pe_table = pe_table.astype(x.dtype)

    itemsize = jnp.dtype(x.dtype).itemsize
    if B * S * E * itemsize < min_pallas_bytes:
        # KB-scale activations: a fused XLA add beats any pallas_call launch.
        return x + pe_table[None, :S, :]

    bb, ts = _pick_blocks(B, S, E, itemsize)
    if seq_tile is not None:
        ts = seq_tile
    if batch_block is not None:
        bb = batch_block
    bb = min(bb, B)
    n_s = pl.cdiv(S, ts)
    n_b = pl.cdiv(B, bb)

    cost = pl.CostEstimate(
        flops=B * S * E,
        transcendentals=0,
        bytes_accessed=(2 * B * S * E + S * E) * itemsize,   # x in + out + pe once
    )

    return pl.pallas_call(
        _add_pe_kernel,
        out_shape=jax.ShapeDtypeStruct((B, S, E), x.dtype),
        grid_spec=pltpu.PrefetchScalarGridSpec(
            num_scalar_prefetch=0,
            # Seq-tile axis OUTER, batch-block axis INNER: the PE block index
            # depends only on the outer axis -> PE tile stays resident while the
            # inner batch loop streams x/out.
            grid=(n_s, n_b),
            in_specs=[
                pl.BlockSpec((bb, ts, E), lambda s, b: (b, s, 0)),   # x
                pl.BlockSpec((ts, E), lambda s, b: (s, 0)),          # pe (full table)
            ],
            out_specs=pl.BlockSpec((bb, ts, E), lambda s, b: (b, s, 0)),
        ),
        compiler_params=pltpu.CompilerParams(
            dimension_semantics=("parallel", "parallel"),
            vmem_limit_bytes=_VMEM_LIMIT_BYTES,
        ),
        cost_estimate=cost,
        # Optional: alias x -> out when the caller no longer needs x (skips a
        # second B*S*E HBM allocation around a bandwidth-bound op).
        input_output_aliases=({0: 0} if donate_x else {}),
    )(x, pe_table)


if __name__ == "__main__":
    key = jax.random.PRNGKey(0)

    # Module-spec constants: embed_size=512, max_len=100.  Table built once in
    # the target dtype (parameter setup, plain JAX).
    embed_size, max_len = 512, 100
    pe_table = make_pos_encoding(max_len, embed_size, dtype=jnp.float32)

    # Case 1: module-consistent small shapes (B=2, S=8, E=512).  Force the
    # Pallas path (min_pallas_bytes=0) so the kernel itself is exercised.
    batch, seq = 2, 8
    x = jax.random.normal(key, (batch, seq, embed_size), dtype=jnp.float32)
    out = jax.block_until_ready(
        positional_encoding_forward(x, pe_table, min_pallas_bytes=0))
    ref = x + pe_table[None, :seq, :]
    assert out.shape == x.shape
    assert jnp.allclose(out, ref, atol=1e-6), "mismatch vs reference (batch-folded block)"

    # Case 2: force the multi-tile grid (6 seq tiles x 2 batch blocks) to
    # exercise the tiled / resident-PE path.
    batch2, seq2 = 2, 96
    x2 = jax.random.normal(jax.random.fold_in(key, 1),
                           (batch2, seq2, embed_size), dtype=jnp.float32)
    out2 = jax.block_until_ready(
        positional_encoding_forward(x2, pe_table, seq_tile=16, batch_block=1,
                                    min_pallas_bytes=0))
    ref2 = x2 + pe_table[None, :seq2, :]
    assert out2.shape == x2.shape
    assert jnp.allclose(out2, ref2, atol=1e-6), "mismatch vs reference (tiled)"

    # Case 3: default call -> tiny-shape fallback (fused XLA add) stays correct.
    out3 = jax.block_until_ready(positional_encoding_forward(x, pe_table))
    assert jnp.allclose(out3, ref, atol=1e-6), "mismatch vs reference (fallback)"

    print("KERNEL_OK")
</pallas_src>

<mosaic_0001>
module attributes {stable_mosaic.version = 11 : i64} {
  func.func @_add_pe_kernel(%arg0: i32, %arg1: i32, %arg2: memref<2x8x512xf32, #tpu.memory_space<vmem>>, %arg3: memref<8x512xf32, #tpu.memory_space<vmem>>, %arg4: memref<2x8x512xf32, #tpu.memory_space<vmem>>) attributes {dimension_semantics = [#tpu.dimension_semantics<parallel>, #tpu.dimension_semantics<parallel>], iteration_bounds = array<i64: 1, 1>, scalar_prefetch = 0 : i64, scratch_operands = 0 : i64, tpu.core_type = #tpu.core_type<tc>, window_params = [{transform_indices = @transform_0, window_bounds = array<i64: 2, 8, 512>}, {transform_indices = @transform_1, window_bounds = array<i64: 8, 512>}, {transform_indices = @transform_2, window_bounds = array<i64: 2, 8, 512>}]} {
    %c0 = arith.constant 0 : index
    %c0_0 = arith.constant 0 : index
    %c0_1 = arith.constant 0 : index
    %0 = vector.load %arg2[%c0, %c0_0, %c0_1] : memref<2x8x512xf32, #tpu.memory_space<vmem>>, vector<2x8x512xf32>
    %c0_2 = arith.constant 0 : index
    %c0_3 = arith.constant 0 : index
    %1 = vector.load %arg3[%c0_2, %c0_3] : memref<8x512xf32, #tpu.memory_space<vmem>>, vector<8x512xf32>
    %2 = vector.shape_cast %1 : vector<8x512xf32> to vector<1x8x512xf32>
    %3 = vector.broadcast %2 : vector<1x8x512xf32> to vector<2x8x512xf32>
    %4 = arith.addf %0, %3 : vector<2x8x512xf32>
    %c0_4 = arith.constant 0 : index
    %c0_5 = arith.constant 0 : index
    %c0_6 = arith.constant 0 : index
    %5 = vector.load %arg4[%c0_4, %c0_5, %c0_6] : memref<2x8x512xf32, #tpu.memory_space<vmem>>, vector<2x8x512xf32>
    tpu.vector_store %arg4[%c0_4, %c0_5, %c0_6], %4 {strides = array<i32>} : memref<2x8x512xf32, #tpu.memory_space<vmem>>, vector<2x8x512xf32>,
    return
  }
  func.func @transform_0(%arg0: i32, %arg1: i32) -> (i32, i32, i32) {
    %c0_i32 = arith.constant 0 : i32
    %c0_i32_0 = arith.constant 0 : i32
    return %arg1, %arg0, %c0_i32 : i32, i32, i32
  }
  func.func @transform_1(%arg0: i32, %arg1: i32) -> (i32, i32) {
    %c0_i32 = arith.constant 0 : i32
    %c0_i32_0 = arith.constant 0 : i32
    return %arg0, %c0_i32 : i32, i32
  }
  func.func @transform_2(%arg0: i32, %arg1: i32) -> (i32, i32, i32) {
    %c0_i32 = arith.constant 0 : i32
    %c0_i32_0 = arith.constant 0 : i32
    return %arg1, %arg0, %c0_i32 : i32, i32, i32
  }
}

</mosaic_0001>

<bundles_post_ra>
// kernel: tpu_custom_call.1
= control target key start
LH: loop header
LB: loop body
LE: loop exit
PB: predicated region body
PF: predicated region fallthrough
CT: control target
= control target key end

     0   :  { %7 = vsyncpa [#allocation3], 0  ;;  %s208_s0 = inlined_call_operand.hbm [shape: f32[2,8,512], index: 0, kind: input, shape index: {}]   ;;  %s209_s1 = inlined_call_operand.hbm [shape: f32[100,512], index: 1, kind: input, shape index: {}]   ;;  %s210_s2 = inlined_call_operand.hbm [shape: f32[2,8,512], index: 2, kind: output, shape index: {}]  }
   0x1   :  { %8 = vsyncpa [#allocation6], 0 }
   0x2   :  { %9 = vsyncpa [#allocation4], 0  ;;  %s14_s11 = sshll.u32 %s208_s0, 4  ;;  %s173_s12 = smov [#allocation2]   ;;  %s15_s11 = int_to_ptr.hbm [resolvable:$true] %s14_s11 }
   0x3   :  { %s16_s13 = sshll.u32 %s173_s12, 4  ;;  %s28_s16 = sshll.u32 %s209_s1, 4  ;;  %s17_s13 = int_to_ptr.vmem [resolvable:$true] %s16_s13  ;;  %s29_s16 = int_to_ptr.hbm [resolvable:$true] %s28_s16 }
   0x4   :  { %s174_s17 = smov 512   ;;  %s175_s18 = smov 32  }
   0x5   :  { %22 = dma.hbm_to_vmem [thread:$0]  %s15_s11, 1024, %s17_s13, [#allocation3], %s174_s17, %s174_s17, %s175_s18  }
   0x6   :  { %s176_s19 = smov [#allocation5]  }
   0x7   :  { %s30_s20 = sshll.u32 %s176_s19, 4  ;;  %s31_s20 = int_to_ptr.vmem [resolvable:$true] %s30_s20 }
   0x8   :  { %33 = dma.hbm_to_vmem [thread:$0]  %s29_s16, 512, %s31_s20, [#allocation6]  }
   0x9   :  { %167 = dma.done.wait [#allocation3], 1024  }
   0xa   :  { %168 = vsyncadd [#allocation3], 4294966272 }
   0xb   :  { %169 = dma.done.wait [#allocation6], 512  }
   0xc   :  { %170 = vsyncadd [#allocation6], 4294966784  ;;  %v42_v0 = vld [vmem:[#allocation2] sm:$0xff]  ;;  %v43_v2 = vld [vmem:[#allocation2 + $0x8] sm:$0xff]  ;;  %s177_s0 = smov [#allocation7]   ;;  %s76_s23 = sshll.u32 %s210_s2, 4  ;;  %s77_s23 = int_to_ptr.hbm [resolvable:$true] %s76_s23 }
   0xd   :  { %v50_v1 = vld [vmem:[#allocation5] sm:$0xff]  ;;  %v51_v4 = vld [vmem:[#allocation5 + $0x8] sm:$0xff]  ;;  %v44_v5 = vld [vmem:[#allocation2 + $0x10] sm:$0xff]  ;;  %s74_s1 = sshll.u32 %s177_s0, 4  ;;  %s75_s1 = int_to_ptr.vmem [resolvable:$true] %s74_s1 }
   0xe   :  { %v54_v3 = vadd.f32 %v50_v1, %v42_v0  ;;  %v52_v6 = vld [vmem:[#allocation5 + $0x10] sm:$0xff]  ;;  %v55_v7 = vadd.f32 %v51_v4, %v43_v2  ;;  %v45_v9 = vld [vmem:[#allocation2 + $0x18] sm:$0xff]  ;;  %v46_v11 = vld [vmem:[#allocation2 + $0x20] sm:$0xff] }
   0xf   :  { %v56_v8 = vadd.f32 %v52_v6, %v44_v5  ;;  %v53_v10 = vld [vmem:[#allocation5 + $0x18] sm:$0xff]  ;;  %v58_v13 = vadd.f32 %v50_v1, %v46_v11  ;;  %v47_v14 = vld [vmem:[#allocation2 + $0x28] sm:$0xff]  ;;  %v48_v15 = vld [vmem:[#allocation2 + $0x30] sm:$0xff] }
  0x10   :  { %62 = vst [vmem:[#allocation7] sm:$0xff] %v54_v3  ;;  %v57_v12 = vadd.f32 %v53_v10, %v45_v9  ;;  %v49_v16 = vld [vmem:[#allocation2 + $0x38] sm:$0xff]  ;;  %v59_v17 = vadd.f32 %v51_v4, %v47_v14  ;;  %v60_v18 = vadd.f32 %v52_v6, %v48_v15 }
  0x11   :  { %63 = vst [vmem:[#allocation7 + $0x8] sm:$0xff] %v55_v7  ;;  %v61_v19 = vadd.f32 %v53_v10, %v49_v16 }
  0x12   :  { %64 = vst [vmem:[#allocation7 + $0x10] sm:$0xff] %v56_v8 }
  0x13   :  { %65 = vst [vmem:[#allocation7 + $0x18] sm:$0xff] %v57_v12 }
  0x14   :  { %66 = vst [vmem:[#allocation7 + $0x20] sm:$0xff] %v58_v13 }
  0x15   :  { %67 = vst [vmem:[#allocation7 + $0x28] sm:$0xff] %v59_v17 }
  0x16   :  { %68 = vst [vmem:[#allocation7 + $0x30] sm:$0xff] %v60_v18 }
  0x17   :  { %69 = vst [vmem:[#allocation7 + $0x38] sm:$0xff] %v61_v19 }
  0x18   :  { %82 = dma.vmem_to_hbm [thread:$0]  %s75_s1, 1024, %s77_s23, [#allocation4], %s174_s17, %s174_s17, %s175_s18  }
  0x19   :  { %171 = dma.done.wait [#allocation4], 1024  }
  0x1a   :  { %172 = vsyncadd [#allocation4], 4294966272 }
  0x1b   :  { %87 = vsyncpa [#allocation3], 1 }
  0x1c   :  { %88 = vsyncpa [#allocation6], 1 }
  0x1d   :  { %89 = vsyncpa [#allocation4], 1 }

</bundles_post_ra>
